<compile_context>
chip_gen: v7x
topology: tpu7x:2x2x1
jax: 0.10.0
libtpu: 0.0.40
codegen_flags: <defaults>
</compile_context>

<pallas_src>
import functools

import jax
import jax.numpy as jnp
from jax.experimental import pallas as pl
from jax.experimental.pallas import tpu as pltpu


def _sepconv_kernel(x_ref, w_ref, o_ref, *, ksize, pad):
    """One batch element, NCL layout.

    x_ref : (1, Cin, L)     activation (Cin -> sublanes, L -> lanes)
    w_ref : (k, Cout, Cin)  folded weights: W_t[o, c] = W_pw[o, c] * w_dw[c, t]
    o_ref : (1, Cout, L)
    """
    x = x_ref[0].astype(jnp.float32)                 # (Cin, L)
    cin, length = x.shape
    lane = jax.lax.broadcasted_iota(jnp.int32, (cin, length), 1)

    # out[o, l] = sum_t sum_c (W_pw[o,c] * w_dw[c,t]) * x[c, l + t - pad]
    acc = None
    for t in range(ksize):                           # k is tiny -> static unroll
        d = t - pad
        if d == 0:
            shifted = x
        else:
            # Lane rotation on the XLU; zero the wrapped lanes == implicit zero padding.
            shifted = pltpu.roll(x, shift=(-d) % length, axis=1)
            valid = jnp.logical_and(lane + d >= 0, lane + d < length)
            shifted = jnp.where(valid, shifted, 0.0)
        contrib = jnp.dot(w_ref[t], shifted, preferred_element_type=jnp.float32)
        acc = contrib if acc is None else acc + contrib
    o_ref[0] = acc.astype(o_ref.dtype)


def separable_conv1d_act(x, w_depthwise, w_pointwise):
    """Forward of SeparableConv1dACT.

    x           : (B, Cin, L)     float32, PyTorch NCL layout
    w_depthwise : (Cin, 1, k)     conv1.weight     (groups=Cin, bias=False)
    w_pointwise : (Cout, Cin, 1)  pointwise.weight (bias=False)
    returns     : (B, Cout, L)    float32
    """
    B, cin, length = x.shape
    cout = w_pointwise.shape[0]
    k = w_depthwise.shape[-1]
    assert k % 2 == 1, "odd kernel_size expected ('same' padding)"
    pad = (k - 1) // 2

    # One-time weight fold (constant-folds under jit): W_t = W_pw * w_dw[:, t]^T.
    w_pw = w_pointwise[:, :, 0].astype(jnp.float32)            # (Cout, Cin)
    w_dw = w_depthwise[:, 0, :].astype(jnp.float32)            # (Cin, k)
    w_folded = w_pw[None, :, :] * jnp.transpose(w_dw, (1, 0))[:, None, :]  # (k,Cout,Cin)

    flops = 2 * B * k * cout * cin * length
    bytes_accessed = 4 * (B * cin * length + k * cout * cin + B * cout * length)

    kern = functools.partial(_sepconv_kernel, ksize=k, pad=pad)
    return pl.pallas_call(
        kern,
        out_shape=jax.ShapeDtypeStruct((B, cout, length), jnp.float32),
        grid_spec=pltpu.PrefetchScalarGridSpec(
            num_scalar_prefetch=0,
            grid=(B,),
            in_specs=[
                pl.BlockSpec((1, cin, length), lambda b: (b, 0, 0)),
                pl.BlockSpec((k, cout, cin), lambda b: (0, 0, 0)),
            ],
            out_specs=pl.BlockSpec((1, cout, length), lambda b: (b, 0, 0)),
        ),
        compiler_params=pltpu.CompilerParams(
            dimension_semantics=("parallel",)),   # lets v7x use both TensorCores
        cost_estimate=pl.CostEstimate(
            flops=flops, transcendentals=0, bytes_accessed=bytes_accessed),
    )(x.astype(jnp.float32), w_folded)


if __name__ == "__main__":
    # Shapes from the module docstring: input [2, 32, 128] -> output [2, 64, 128], k=3.
    B, CIN, COUT, L, K = 2, 32, 64, 128, 3
    PAD = (K - 1) // 2

    root = jax.random.PRNGKey(0)
    kx, kdw, kpw = jax.random.split(root, 3)
    x = jax.random.normal(kx, (B, CIN, L), jnp.float32)
    # normal_init: weight ~ N(0, 0.05); bias=False for both convs in this module.
    w_dw = 0.05 * jax.random.normal(kdw, (CIN, 1, K), jnp.float32)      # conv1.weight
    w_pw = 0.05 * jax.random.normal(kpw, (COUT, CIN, 1), jnp.float32)   # pointwise.weight

    fwd = jax.jit(separable_conv1d_act)
    out = fwd(x, w_dw, w_pw)
    jax.block_until_ready(out)
    assert out.shape == (B, COUT, L), out.shape
    assert bool(jnp.all(jnp.isfinite(out)))

    # f32 XLA reference (depthwise conv then 1x1 conv) for a correctness sanity check.
    ref = jax.lax.conv_general_dilated(
        x, w_dw, (1,), [(PAD, PAD)],
        dimension_numbers=("NCH", "OIH", "NCH"),
        feature_group_count=CIN, precision=jax.lax.Precision.HIGHEST)
    ref = jax.lax.conv_general_dilated(
        ref, w_pw, (1,), [(0, 0)],
        dimension_numbers=("NCH", "OIH", "NCH"),
        precision=jax.lax.Precision.HIGHEST)
    err = float(jnp.max(jnp.abs(out - ref)))
    assert jnp.allclose(out, ref, atol=1e-3, rtol=1e-3), err

    print("KERNEL_OK")
</pallas_src>

<mosaic_0001>
module attributes {stable_mosaic.version = 11 : i64} {
  func.func @_sepconv_kernel(%arg0: i32, %arg1: memref<1x32x128xf32, #tpu.memory_space<vmem>>, %arg2: memref<3x64x32xf32, #tpu.memory_space<vmem>>, %arg3: memref<1x64x128xf32, #tpu.memory_space<vmem>>) attributes {dimension_semantics = [#tpu.dimension_semantics<parallel>], iteration_bounds = array<i64: 2>, scalar_prefetch = 0 : i64, scratch_operands = 0 : i64, tpu.core_type = #tpu.core_type<tc>, window_params = [{transform_indices = @transform_0, window_bounds = array<i64: 1, 32, 128>}, {pipeline_mode = #tpu.pipeline_mode<synchronous>, transform_indices = @transform_1, window_bounds = array<i64: 3, 64, 32>}, {transform_indices = @transform_2, window_bounds = array<i64: 1, 64, 128>}]} {
    %c0 = arith.constant 0 : index
    %c0_0 = arith.constant 0 : index
    %c0_1 = arith.constant 0 : index
    %0 = vector.load %arg1[%c0, %c0_0, %c0_1] : memref<1x32x128xf32, #tpu.memory_space<vmem>>, vector<1x32x128xf32>
    %1 = vector.shape_cast %0 : vector<1x32x128xf32> to vector<32x128xf32>
    %2 = tpu.iota {dimensions = array<i32: 1>} : vector<32x128xi32>
    %c1_i32 = arith.constant 1 : i32
    %3 = tpu.dynamic_rotate %1 by %c1_i32 dim 1 : vector<32x128xf32>, i32 -> vector<32x128xf32>
    %c-1_i32 = arith.constant -1 : i32
    %4 = vector.broadcast %c-1_i32 : i32 to vector<32x128xi32>
    %5 = arith.addi %2, %4 : vector<32x128xi32>
    %c0_i32 = arith.constant 0 : i32
    %6 = vector.broadcast %c0_i32 : i32 to vector<32x128xi32>
    %7 = arith.cmpi sge, %5, %6 : vector<32x128xi32>
    %c-1_i32_2 = arith.constant -1 : i32
    %8 = vector.broadcast %c-1_i32_2 : i32 to vector<32x128xi32>
    %9 = arith.addi %2, %8 : vector<32x128xi32>
    %c128_i32 = arith.constant 128 : i32
    %10 = vector.broadcast %c128_i32 : i32 to vector<32x128xi32>
    %11 = arith.cmpi slt, %9, %10 : vector<32x128xi32>
    %12 = arith.andi %7, %11 : vector<32x128xi1>
    %cst = arith.constant 0.000000e+00 : f32
    %13 = vector.broadcast %cst : f32 to vector<32x128xf32>
    %14 = arith.select %12, %3, %13 : vector<32x128xi1>, vector<32x128xf32>
    %c0_3 = arith.constant 0 : index
    %c0_4 = arith.constant 0 : index
    %c0_5 = arith.constant 0 : index
    %15 = vector.load %arg2[%c0_3, %c0_4, %c0_5] : memref<3x64x32xf32, #tpu.memory_space<vmem>>, vector<1x64x32xf32>
    %16 = vector.shape_cast %15 : vector<1x64x32xf32> to vector<64x32xf32>
    %cst_6 = arith.constant dense<0.000000e+00> : vector<64x128xf32>
    %17 = tpu.matmul %16, %14, %cst_6 {dimension_numbers = #tpu.dot_dimension_numbers<[1], [0], [0], [1], [0, 0, 1, 1], [], []>} : vector<64x32xf32>, vector<32x128xf32>, vector<64x128xf32> -> vector<64x128xf32>
    %c1 = arith.constant 1 : index
    %c0_7 = arith.constant 0 : index
    %c0_8 = arith.constant 0 : index
    %18 = vector.load %arg2[%c1, %c0_7, %c0_8] : memref<3x64x32xf32, #tpu.memory_space<vmem>>, vector<1x64x32xf32>
    %19 = vector.shape_cast %18 : vector<1x64x32xf32> to vector<64x32xf32>
    %cst_9 = arith.constant dense<0.000000e+00> : vector<64x128xf32>
    %20 = tpu.matmul %19, %1, %cst_9 {dimension_numbers = #tpu.dot_dimension_numbers<[1], [0], [0], [1], [0, 0, 1, 1], [], []>} : vector<64x32xf32>, vector<32x128xf32>, vector<64x128xf32> -> vector<64x128xf32>
    %21 = arith.addf %17, %20 : vector<64x128xf32>
    %c127_i32 = arith.constant 127 : i32
    %22 = tpu.dynamic_rotate %1 by %c127_i32 dim 1 : vector<32x128xf32>, i32 -> vector<32x128xf32>
    %c1_i32_10 = arith.constant 1 : i32
    %23 = vector.broadcast %c1_i32_10 : i32 to vector<32x128xi32>
    %24 = arith.addi %2, %23 : vector<32x128xi32>
    %c0_i32_11 = arith.constant 0 : i32
    %25 = vector.broadcast %c0_i32_11 : i32 to vector<32x128xi32>
    %26 = arith.cmpi sge, %24, %25 : vector<32x128xi32>
    %c1_i32_12 = arith.constant 1 : i32
    %27 = vector.broadcast %c1_i32_12 : i32 to vector<32x128xi32>
    %28 = arith.addi %2, %27 : vector<32x128xi32>
    %c128_i32_13 = arith.constant 128 : i32
    %29 = vector.broadcast %c128_i32_13 : i32 to vector<32x128xi32>
    %30 = arith.cmpi slt, %28, %29 : vector<32x128xi32>
    %31 = arith.andi %26, %30 : vector<32x128xi1>
    %cst_14 = arith.constant 0.000000e+00 : f32
    %32 = vector.broadcast %cst_14 : f32 to vector<32x128xf32>
    %33 = arith.select %31, %22, %32 : vector<32x128xi1>, vector<32x128xf32>
    %c2 = arith.constant 2 : index
    %c0_15 = arith.constant 0 : index
    %c0_16 = arith.constant 0 : index
    %34 = vector.load %arg2[%c2, %c0_15, %c0_16] : memref<3x64x32xf32, #tpu.memory_space<vmem>>, vector<1x64x32xf32>
    %35 = vector.shape_cast %34 : vector<1x64x32xf32> to vector<64x32xf32>
    %cst_17 = arith.constant dense<0.000000e+00> : vector<64x128xf32>
    %36 = tpu.matmul %35, %33, %cst_17 {dimension_numbers = #tpu.dot_dimension_numbers<[1], [0], [0], [1], [0, 0, 1, 1], [], []>} : vector<64x32xf32>, vector<32x128xf32>, vector<64x128xf32> -> vector<64x128xf32>
    %37 = arith.addf %21, %36 : vector<64x128xf32>
    %c0_18 = arith.constant 0 : index
    %c0_19 = arith.constant 0 : index
    %c0_20 = arith.constant 0 : index
    %38 = vector.load %arg3[%c0_18, %c0_19, %c0_20] : memref<1x64x128xf32, #tpu.memory_space<vmem>>, vector<1x64x128xf32>
    %39 = vector.shape_cast %38 : vector<1x64x128xf32> to vector<64x128xf32>
    %40 = vector.shape_cast %37 : vector<64x128xf32> to vector<1x64x128xf32>
    tpu.vector_store %arg3[%c0_18, %c0_19, %c0_20], %40 {strides = array<i32>} : memref<1x64x128xf32, #tpu.memory_space<vmem>>, vector<1x64x128xf32>,
    return
  }
  func.func @transform_0(%arg0: i32) -> (i32, i32, i32) {
    %c0_i32 = arith.constant 0 : i32
    %c0_i32_0 = arith.constant 0 : i32
    %c0_i32_1 = arith.constant 0 : i32
    return %arg0, %c0_i32, %c0_i32_0 : i32, i32, i32
  }
  func.func @transform_1(%arg0: i32) -> (i32, i32, i32) {
    %c0_i32 = arith.constant 0 : i32
    %c0_i32_0 = arith.constant 0 : i32
    %c0_i32_1 = arith.constant 0 : i32
    %c0_i32_2 = arith.constant 0 : i32
    return %c0_i32, %c0_i32_0, %c0_i32_1 : i32, i32, i32
  }
  func.func @transform_2(%arg0: i32) -> (i32, i32, i32) {
    %c0_i32 = arith.constant 0 : i32
    %c0_i32_0 = arith.constant 0 : i32
    %c0_i32_1 = arith.constant 0 : i32
    return %arg0, %c0_i32, %c0_i32_0 : i32, i32, i32
  }
}

</mosaic_0001>

<bundles_post_ra>
// kernel: separable_conv1d_act.1
= control target key start
LH: loop header
LB: loop body
LE: loop exit
PB: predicated region body
PF: predicated region fallthrough
CT: control target
= control target key end

     0   :  { %7 = vsyncpa [#allocation3], 0  ;;  %s1278_s0 = inlined_call_operand.vmem [shape: f32[2,32,128], index: 0, kind: input, shape index: {}]   ;;  %s1279_s1 = inlined_call_operand.vmem [shape: f32[3,64,32], index: 1, kind: input, shape index: {}]   ;;  %s1280_s2 = inlined_call_operand.hbm [shape: f32[2,64,128], index: 2, kind: output, shape index: {}]  }
   0x1   :  { %9 = vsyncpa [#allocation3 + $0x1], 0  ;;  %s1043_s9 = smov 0   ;;  %s1045_s10 = smov 0  }
   0x2   :  { %s1047_s11 = smov 0   ;;  %s1049_s12 = smov 0  }
   0x3 LB: > { %s1064_s13 = sadd.s32 4294967295, %s1021_s12   ;;  %s686_s14 = sadd.s32 4294967294, %s1021_s12   ;;  %s1021_s12 = sphi %s1049_s12, %s1290_s12   ;;  %s1017_s11 = sphi %s1047_s11, %s1289_s11   ;;  %s1013_s10 = sphi %s1045_s10, %s1288_s10   ;;  %s1009_s9 = sphi %s1043_s9, %s1287_s9  }
   0x4   : > { %s1068_s15 = sadd.s32 1, %s1021_s12   ;;  %s69_s16 = sadd.s32 1, %s1017_s11 }
   0x5   : > { %s66_s17 = ssub.s32 %s1021_s12, %s1068_s15  ;;  %p79_p0 = scmp.ne.s32.totalorder %s1017_s11, %s1013_s10 }
   0x6   : > { %p67_p1 = scmp.eq.s32.totalorder %s66_s17, 0  ;;  %p80_p2 = scmp.eq.s32.totalorder %s1064_s13, 1 }
   0x7   : > { %p85_p3 = scmp.ne.s32.totalorder %s1013_s10, %s1009_s9  ;;  %p86_p4 = scmp.eq.s32.totalorder %s686_s14, 1 }
   0x8   : > { %s1079_s18 = scalar_select %p67_p1, %s1017_s11, %s69_s16  }
   0x9   : > { %p1081_p5 = por %p80_p2, %p79_p0  ;;  %p1085_p6 = por %p86_p4, %p85_p3 }
   0xa   : > { %p689_p7 = scmp.ge.s32.totalorder %s1021_s12, 1  ;;  %p115_p8 = scmp.lt.s32.totalorder %s1021_s12, 3 }
   0xc   : > { %p116_p9 = pnand %p689_p7, %p115_p8 }
   0xd   : > { %p137_p10 = scmp.lt.s32.totalorder (!%p116_p9), %s1064_s13, 1  ;;  %v693_v0 = vld [vmem:[%s1279_s1 + $0x40] sm:$0xff] (!%p116_p9)  ;;  %vm181_vm0 = vcmask (!%p116_p9), 261120   ;;  %s1023_s30 = smov (!%p116_p9), 1   ;;  %v694_v10 = vld [vmem:[%s1279_s1 + $0x48] sm:$0xff] (!%p116_p9)  ;;  %v695_v11 = vld [vmem:[%s1279_s1 + $0x50] sm:$0xff] (!%p116_p9)  ;;  %v146_v18 = vlaneseq (!%p116_p9) }
   0xe   : > { %119 = sbr.rel (%p116_p9) target bundleno = 405 (0x195), region = 28  ;;  %792 = vmatprep.mubr.msk.f32.mxu1 (!%p116_p9), %vm181_vm0, %v693_v0  ;;  %v164_v1 = vld [vmem:[%s1279_s1] sm:$0xff] (!%p116_p9)  ;;  %s1024_s3 = smov (!%p116_p9), 127   ;;  %v696_v12 = vld [vmem:[%s1279_s1 + $0x58] sm:$0xff] (!%p116_p9)  ;;  %v698_v14 = vld [vmem:[%s1279_s1 + $0x68] sm:$0xff] (!%p116_p9) }
   0xf   : > { %812 = vmatprep.mubr.msk.f32.mxu0 (!%p116_p9), %vm181_vm0, %v164_v1  ;;  %v697_v13 = vld [vmem:[%s1279_s1 + $0x60] sm:$0xff] (!%p116_p9)  ;;  %v699_v15 = vld [vmem:[%s1279_s1 + $0x70] sm:$0xff] (!%p116_p9)  ;;  %v700_v16 = vld [vmem:[%s1279_s1 + $0x78] sm:$0xff] (!%p116_p9)  ;;  %v147_v19 = vand.u32 (!%p116_p9), 127, %v146_v18  ;;  %s134_s16 = sand.u32 (!%p116_p9), 1, %s1013_s10   ;;  %s747_s22 = sshll.u32 (!%p116_p9), %s1064_s13, 10 }
  0x10   : > { %v168_v17 = vld [vmem:[%s1279_s1 + $0x20] sm:$0xff] (!%p116_p9)  ;;  %v165_v39 = vld [vmem:[%s1279_s1 + $0x8] sm:$0xff] (!%p116_p9)  ;;  %v166_v42 = vld [vmem:[%s1279_s1 + $0x10] sm:$0xff] (!%p116_p9)  ;;  %s690_s17 = sshll.u32 (!%p116_p9), %s134_s16, 6  ;;  %s1231_s26 = scalar_lea.hbm (!%p116_p9), %s1280_s2, %s747_s22 }
  0x11   : > { %v156_v20 = vadd.s32 (!%p116_p9), 4294967295, %v147_v19  ;;  %v448_v25 = vadd.s32 (!%p116_p9), 1, %v147_v19  ;;  %v169_v40 = vld [vmem:[%s1279_s1 + $0x28] sm:$0xff] (!%p116_p9)  ;;  %v170_v43 = vld [vmem:[%s1279_s1 + $0x30] sm:$0xff] (!%p116_p9)  ;;  %v167_v44 = vld [vmem:[%s1279_s1 + $0x18] sm:$0xff] (!%p116_p9)  ;;  %s136_s21 = scalar_lea.vmem (!%p116_p9), [#allocation2], %s690_s17 }
  0x12   : > { %v171_v45 = vld [vmem:[%s1279_s1 + $0x38] sm:$0xff] (!%p116_p9)  ;;  %v721_v46 = vld [vmem:[%s1279_s1 + $0x80] sm:$0xff] (!%p116_p9)  ;;  %v722_v47 = vld [vmem:[%s1279_s1 + $0x88] sm:$0xff] (!%p116_p9)  ;;  %s1025_s28 = smov (!%p116_p9), [#allocation2]  }
  0x13   : > { %vm157_vm1 = vcmp.ge.s32.totalorder (!%p116_p9), %v156_v20, 0  ;;  %vm450_vm3 = vcmp.lt.s32.totalorder (!%p116_p9), %v448_v25, 128  ;;  %v723_v48 = vld [vmem:[%s1279_s1 + $0x90] sm:$0xff] (!%p116_p9)  ;;  %v724_v49 = vld [vmem:[%s1279_s1 + $0x98] sm:$0xff] (!%p116_p9)  ;;  %v725_v50 = vld [vmem:[%s1279_s1 + $0xa0] sm:$0xff] (!%p116_p9)  ;;  %s963_s29 = sshll.u32 (!%p116_p9), %s1025_s28, 4  ;;  %s964_s29 = int_to_ptr.vmem [resolvable:$false] %s963_s29 }
  0x14   : > { %vm1136_vm2 = vmpackc.low (!%p116_p9), %vm157_vm1, %vm157_vm1  ;;  %v726_v51 = vld [vmem:[%s1279_s1 + $0xa8] sm:$0xff] (!%p116_p9)  ;;  %v727_v52 = vld [vmem:[%s1279_s1 + $0xb0] sm:$0xff] (!%p116_p9) }
  0x15   : > { %s138_s23 = scalar_select %p137_p10, %s1064_s13, 1  ;;  %vm1148_vm4 = vmpackc.low %vm450_vm3, %vm450_vm3  ;;  %v728_v53 = vld [vmem:[%s1279_s1 + $0xb8] sm:$0xff] }
  0x16   : > { %s1237_s13 = scalar_lea.sflag [#allocation3], %s134_s16 }
  0x17   : > { %s746_s24 = sshll.u32 %s138_s23, 5  ;;  %s624_s23 = sshll.u32 %s136_s21, 4  ;;  %s1233_s23 = int_to_ptr.vmem [resolvable:$true] %s624_s23 }
  0x18   : > { %s141_s27 = scalar_lea.vmem %s1278_s0, %s746_s24  ;;  %p966_p0 = scmp.lt.s32.totalorder %s1233_s23, %s964_s29 }
  0x19   : > { %v142_v2 = vld [vmem:[%s141_s27] sm:$0xff]  ;;  %v143_v3 = vld [vmem:[%s141_s27 + $0x8] sm:$0xff]  ;;  %v144_v4 = vld [vmem:[%s141_s27 + $0x10] sm:$0xff] }
  0x1a   : > { %v939_v5 = vpack.i.bf16 %v143_v3, %v142_v2  ;;  %v145_v6 = vld [vmem:[%s141_s27 + $0x18] sm:$0xff]  ;;  %v844_v7 = vpack.c.bf16 %v143_v3, %v142_v2  ;;  %s959_s27 = scalar_lea.vmem %s1233_s23, 1024 }
  0x1b   : > { %v848_v8 = vpack.c.bf16 %v145_v6, %v144_v4  ;;  %v944_v9 = vpack.i.bf16 %v145_v6, %v144_v4  ;;  %p960_p11 = scmp.ne.s32.totalorder %s1233_s23, %s959_s27 }
  0x1c   : > { %940 = vrot.lane.b32.xlu0 %v939_v5, %s1023_s30  ;;  %950 = vrot.lane.b32.xlu1 %v939_v5, %s1024_s3 }
  0x1d   : > { %845 = vmatprep.subr.bf16.mxu1 %v844_v7  ;;  %p961_p12 = pnand %p960_p11, %p1081_p5 }
  0x1e   : > { %847 = vmatpush3.bf16.msra.mxu1 %v844_v7 }
  0x1f   : > { %849 = vmatprep.subr.bf16.mxu1 %v848_v8  ;;  %p962_p13 = pneg %p961_p12 }
  0x20   : > { %945 = vrot.lane.b32.xlu0 %v944_v9, %s1023_s30  ;;  %955 = vrot.lane.b32.xlu1 %v944_v9, %s1024_s3  ;;  %s965_s30 = scalar_lea.vmem %s964_s29, 2048 }
  0x21   : > { %p967_p1 = scmp.lt.s32.totalorder %s965_s30, %s959_s27 }
  0x22   : > { %851 = vmatpush3.bf16.msra.mxu1 %v848_v8 }
  0x23   : > { %p968_p2 = por %p967_p1, %p966_p0 }
  0x25   : > { %793 = vmatmul.mubr.msk.f32.vlgmr.msra.gmra.mrb[0].mxu1 %vm181_vm0, %v694_v10  ;;  %p969_p3 = pnand %p968_p2, %p962_p13 }
  0x26   : > { %795 = vmatprep.mubr.msk.f32.mxu1 %vm181_vm0, %v695_v11 }
  0x29   : > { %796 = vmatmul.mubr.msk.f32.gmra.mrb[2].mxu1 %vm181_vm0, %v696_v12 }
  0x2a   : > { %798 = vmatprep.mubr.msk.f32.mxu1 %vm181_vm0, %v697_v13 }
  0x2d   : > { %799 = vmatmul.mubr.msk.f32.gmra.mrb[4].mxu1 %vm181_vm0, %v698_v14 }
  0x2e   : > { %801 = vmatprep.mubr.msk.f32.mxu1 %vm181_vm0, %v699_v15 }
  0x31   : > { %802 = vmatmul.mubr.msk.f32.gmra.mrb[6].mxu1 %vm181_vm0, %v700_v16 }
  0x32   : > { %818 = vmatprep.mubr.msk.f32.mxu1 %vm181_vm0, %v168_v17 }
  0x8e   : > { %v941_v21 = vpop.permute.xlu0 %940  ;;  %v951_v22 = vpop.permute.xlu1 %950 }
  0x8f   : > { %v943_v23 = vunpack.i.h.bf16 %v941_v21  ;;  %v942_v24 = vunpack.i.l.bf16 %v941_v21  ;;  %v953_v28 = vunpack.i.h.bf16 %v951_v22  ;;  %v952_v29 = vunpack.i.l.bf16 %v951_v22 }
  0x91   : > { %v852_v27 = vpack.c.bf16 %v943_v23, %v942_v24  ;;  %v864_v35 = vpack.c.bf16 %v953_v28, %v952_v29 }
  0x92   : > { %v946_v30 = vpop.permute.xlu0 %945  ;;  %v956_v31 = vpop.permute.xlu1 %955 }
  0x93   : > { %v948_v32 = vunpack.i.h.bf16 %v946_v30  ;;  %v947_v33 = vunpack.i.l.bf16 %v946_v30  ;;  %854 = vmatprep.subr.msk.bf16.mxu0 %vm1136_vm2, %v852_v27  ;;  %876 = vmatprep.subr.msk.bf16.mxu1 %vm1136_vm2, %v852_v27  ;;  %v958_v36 = vunpack.i.h.bf16 %v956_v31  ;;  %v957_v37 = vunpack.i.l.bf16 %v956_v31 }
  0x94   : > { %857 = vmatpush3.bf16.msk.msra.mxu0 %vm1136_vm2, %v852_v27  ;;  %878 = vmatpush3.bf16.msk.msra.mxu1 %vm1136_vm2, %v852_v27 }
  0x95   : > { %v858_v34 = vpack.c.bf16 %v948_v32, %v947_v33  ;;  %v870_v41 = vpack.c.bf16 %v958_v36, %v957_v37 }
  0x97   : > { %860 = vmatprep.subr.msk.bf16.mxu0 %vm1136_vm2, %v858_v34  ;;  %877 = vmatprep.subr.msk.bf16.mxu1 %vm1136_vm2, %v858_v34 }
  0x98   : > { %863 = vmatpush3.bf16.msk.msra.mxu0 %vm1136_vm2, %v858_v34  ;;  %879 = vmatpush3.bf16.msk.msra.mxu1 %vm1136_vm2, %v858_v34 }
  0x99   : > { %866 = vmatprep.subr.msk.bf16.mxu0 %vm1148_vm4, %v864_v35 }
  0x9b   : > { %813 = vmatmul.mubr.msk.f32.vlgmr.msra.gmra.mrb[0].mxu0 %vm181_vm0, %v165_v39  ;;  %819 = vmatmul.mubr.msk.f32.vlgmr.msra.gmra.mrb[4].mxu1 %vm181_vm0, %v169_v40 }
  0x9c   : > { %869 = vmatpush3.bf16.msk.msra.mxu0 %vm1148_vm4, %v864_v35  ;;  %815 = vmatprep.mubr.msk.f32.mxu0 %vm181_vm0, %v166_v42 }
  0x9d   : > { %872 = vmatprep.subr.msk.bf16.mxu0 %vm1148_vm4, %v870_v41  ;;  %821 = vmatprep.mubr.msk.f32.mxu1 %vm181_vm0, %v170_v43 }
  0x9f   : > { %816 = vmatmul.mubr.msk.f32.gmra.mrb[2].mxu0 %vm181_vm0, %v167_v44  ;;  %822 = vmatmul.mubr.msk.f32.gmra.mrb[6].mxu1 %vm181_vm0, %v171_v45 }
  0xa0   : > { %875 = vmatpush3.bf16.msk.msra.mxu0 %vm1148_vm4, %v870_v41  ;;  %832 = vmatprep.mubr.msk.f32.mxu0 %vm181_vm0, %v721_v46 }
  0xa3   : > { %833 = vmatmul.mubr.msk.f32.vlgmr.msra.gmra.mrb[0].mxu0 %vm181_vm0, %v722_v47 }
  0xa4   : > { %835 = vmatprep.mubr.msk.f32.mxu0 %vm181_vm0, %v723_v48 }
  0xa7   : > { %836 = vmatmul.mubr.msk.f32.gmra.mrb[2].mxu0 %vm181_vm0, %v724_v49 }
  0xa8   : > { %838 = vmatprep.mubr.msk.f32.mxu0 %vm181_vm0, %v725_v50 }
  0xab   : > { %839 = vmatmul.mubr.msk.f32.gmra.mrb[4].mxu0 %vm181_vm0, %v726_v51 }
  0xac   : > { %841 = vmatprep.mubr.msk.f32.mxu0 %vm181_vm0, %v727_v52 }
  0xaf   : > { %842 = vmatmul.mubr.msk.f32.gmra.mrb[6].mxu0 %vm181_vm0, %v728_v53 }
  0xf8   : > { %v794_v54 = vpop.f32.mrb[0].mxu1 }
  0xf9   : > { %v272_v55 = vpop.f32.mrb[1].mxu1 }
  0xfc   : > { %v797_v56 = vpop.f32.mrb[2].mxu1 }
  0xfd   : > { %v282_v57 = vpop.f32.mrb[3].mxu1 }
 0x16e   : > { %v820_v58 = vpop.f32.mrb[4].mxu1 }
 0x16f   : > { %v421_v59 = vpop.f32.mrb[5].mxu1 }
 0x172   : > { %v823_v60 = vpop.f32.mrb[6].mxu1 }
 0x173   : > { %v431_v61 = vpop.f32.mrb[7].mxu1 }
 0x176   : > { %v834_v62 = vpop.f32.mrb[0].mxu0 }
 0x177   : > { %v880_v63 = vadd.f32 %v834_v62, %v794_v54  ;;  %v555_v0 = vpop.f32.mrb[1].mxu0 }
 0x178   : > { %v881_v1 = vadd.f32 %v555_v0, %v272_v55 }
 0x179   : > { %603 = vst [vmem:[%s136_s21 + $0x8] sm:$0xff] %v880_v63 }
 0x17a   : > { %602 = vst [vmem:[%s136_s21] sm:$0xff] %v881_v1  ;;  %v837_v2 = vpop.f32.mrb[2].mxu0 }
 0x17b   : > { %v882_v3 = vadd.f32 %v837_v2, %v797_v56  ;;  %v565_v4 = vpop.f32.mrb[3].mxu0 }
 0x17c   : > { %v883_v5 = vadd.f32 %v565_v4, %v282_v57 }
 0x17d   : > { %605 = vst [vmem:[%s136_s21 + $0x18] sm:$0xff] %v882_v3 }
 0x17e   : > { %604 = vst [vmem:[%s136_s21 + $0x10] sm:$0xff] %v883_v5  ;;  %v840_v6 = vpop.f32.mrb[4].mxu0 }
 0x17f   : > { %v884_v7 = vadd.f32 %v840_v6, %v820_v58  ;;  %v575_v8 = vpop.f32.mrb[5].mxu0 }
 0x180   : > { %v885_v9 = vadd.f32 %v575_v8, %v421_v59 }
 0x181   : > { %607 = vst [vmem:[%s136_s21 + $0x28] sm:$0xff] %v884_v7 }
 0x182   : > { %606 = vst [vmem:[%s136_s21 + $0x20] sm:$0xff] %v885_v9  ;;  %v843_v10 = vpop.f32.mrb[6].mxu0 }
 0x183   : > { %v886_v11 = vadd.f32 %v843_v10, %v823_v60  ;;  %v585_v12 = vpop.f32.mrb[7].mxu0 }
 0x184   : > { %v887_v13 = vadd.f32 %v585_v12, %v431_v61 }
 0x185   : > { %609 = vst [vmem:[%s136_s21 + $0x38] sm:$0xff] %v886_v11 }
 0x186   : > { %608 = vst [vmem:[%s136_s21 + $0x30] sm:$0xff] %v887_v13 }
 0x187   : > { %972 = shalt.err (!%p969_p3)
}
 0x188   : > { %s973_s3 = scalar_lea.hbm %s1231_s26, 1024  ;;  %s977_s6 = scalar_lea.hbm %s1280_s2, 2048 }
 0x189   : > { %p974_p4 = scmp.ne.s32.totalorder %s1231_s26, %s973_s3  ;;  %p978_p9 = scmp.lt.u32.totalorder %s1231_s26, %s1280_s2 }
 0x18a   : > { %p979_p10 = scmp.lt.u32.totalorder %s977_s6, %s973_s3  ;;  %p981_p12 = scmp.lt.u32.totalorder %s973_s3, %s1231_s26 }
 0x18b   : > { %p975_p7 = pnand %p974_p4, %p1081_p5 }
 0x18c   : > { %p980_p11 = por %p979_p10, %p978_p9 }
 0x18d   : > { %p976_p8 = pneg %p975_p7 }
 0x18e   : > { %p982_p13 = por %p981_p12, %p980_p11 }
 0x190   : > { %p983_p0 = pnand %p982_p13, %p976_p8 }
 0x192   : > { %986 = shalt.err (!%p983_p0)
}
 0x193   : > { %s1026_s14 = smov 128   ;;  %s1027_s16 = smov 8  }
 0x194   : > { %896 = dma.vmem_to_hbm [thread:$0]  (%p1081_p5), %s1233_s23, 1024, %s1231_s26, %s1237_s13, %s1026_s14, %s1026_s14, %s1027_s16  }
 0x195 PF: > { %p902_p1 = scmp.ge.s32.totalorder %s1021_s12, 2  ;;  %s639_s17 = sand.u32 1, %s1009_s9  }
 0x196   : > { %s640_s21 = scalar_lea.sflag [#allocation3], %s639_s17 }
 0x197   : > { %p899_p2 = pnand %p902_p1, %p1085_p6 }
 0x199   : > { %1004 = dma.done.wait (!%p899_p2), %s640_s21, 1024  }
 0x19a   : > { %1006 = vsyncadd (!%p899_p2), %s640_s21, 4294966272  ;;  %p12_p3 = scmp.ge.s32.totalorder %s1068_s15, 4   ;;  %s1287_s9 = smov %s1013_s10 }
 0x19b   : > { %s1288_s10 = smov %s1017_s11  ;;  %s1289_s11 = smov %s1079_s18 }
 0x19c   : > { %s1290_s12 = smov %s1068_s15  ;;  %14 = sbr.rel (!%p12_p3) target bundleno = 3 (0x3), region = 65 }
 0x1a3   :  { %645 = vsyncpa [#allocation3], 1 }
 0x1a4   :  { %647 = vsyncpa [#allocation3 + $0x1], 1 }

</bundles_post_ra>
